<compile_context>
chip_gen: v7x
topology: tpu7x:2x2x1
jax: 0.10.0
libtpu: 0.0.40
codegen_flags: <defaults>
</compile_context>

<pallas_src>
import jax
import jax.numpy as jnp
from jax.experimental import pallas as pl
from jax.experimental.pallas import tpu as pltpu


def agcn_kernel(lap_ref, x_ref, wt_ref, b_ref, o_ref):
    # lap_ref: (R, R)  block-diagonal row-normalized adjacency (bounded, grid-invariant)
    # x_ref:   (R, L)  lane-packed (group, joint) rows for this grid step (compute dtype)
    # wt_ref:  (L, L)  kron(I_P, W^T), lane-packed pre-transposed weight
    # b_ref:   (1, L)  lane-packed bias (f32)
    # o_ref:   (R, L)  output slab (f32)
    x = x_ref[...]

    # Linear layer first (reassociated, exact): (R, L) x (L, L) MXU matmul, f32 accumulate.
    y = jnp.dot(x, wt_ref[...], preferred_element_type=jnp.float32)
    # Back to the compute dtype so the aggregation matmul also runs at native MXU rate.
    y = y.astype(x.dtype)

    # Graph aggregation via the bounded block-diagonal Laplacian, bias added in f32.
    out = jnp.dot(lap_ref[...], y, preferred_element_type=jnp.float32) + b_ref[...]

    o_ref[...] = out.astype(o_ref.dtype)


def agcn_forward(x, adj, w, b, *, row_cap=256, compute_dtype=jnp.bfloat16):
    """AGCN forward.  x: (B, J, F); adj: (J, J); w: (F_out=F, F_in=F); b: (F,)."""
    B, J, F = x.shape
    out_dtype = x.dtype

    # ---- Lane packing: fold P batch elements into the lane (last) axis ---------------
    max_p = max(1, 128 // F)                  # how many F-wide slots fit in 128 lanes
    P = 1
    for cand in range(1, min(B, max_p) + 1):
        if B % cand == 0:
            P = cand
    G = B // P                                # packed "group" count
    L = P * F                                 # lane width (128 when F divides 128)

    # ---- Sublane-aware padding of the joint axis (replaces the whole-batch fallback) --
    sub = 16 if jnp.dtype(compute_dtype).itemsize < 4 else 8
    J_pad = ((J + sub - 1) // sub) * sub

    # ---- Group-tile selection: bounded rows, >= 2 (even) steps preferred for v7x ------
    max_tg = max(1, row_cap // J_pad)
    candidates = [c for c in range(1, G + 1) if G % c == 0 and c <= max_tg] or [1]

    def _score(c):
        n = G // c
        return (
            1 if n >= 2 else 0,                      # both v7x TensorCores get work
            1 if (n >= 2 and n % 2 == 0) else 0,     # balanced across the two TCs
            c,                                       # then the biggest tile
        )

    tg = max(candidates, key=_score)
    n_steps = G // tg
    R = tg * J_pad                                   # rows per grid step (<= row_cap-ish)

    # ---- Grid-invariant precompute, hoisted out of the per-step body ------------------
    d_hat = jnp.sum(adj, axis=1, keepdims=True) + 1e-5
    lap = adj / d_hat                                # (J, J) row-normalized Laplacian
    if J_pad != J:
        lap = jnp.pad(lap, ((0, J_pad - J), (0, J_pad - J)))
    lap_block = jnp.kron(jnp.eye(tg, dtype=lap.dtype), lap)      # (R, R), bounded
    wt_pack = jnp.kron(jnp.eye(P, dtype=w.dtype), w.T)           # (L, L) lane-packed W^T
    b_pack = jnp.tile(b, P).reshape(1, L).astype(jnp.float32)    # (1, L) bias, f32

    # x: (B, J, F) -> (G, P, J, F) -> (G, J, P, F) -> (G, J_pad, L) -> (G*J_pad, L)
    x_pack = x.reshape(G, P, J, F).transpose(0, 2, 1, 3).reshape(G, J, L)
    if J_pad != J:
        x_pack = jnp.pad(x_pack, ((0, 0), (0, J_pad - J), (0, 0)))
    x_flat = x_pack.reshape(G * J_pad, L)

    # Narrow the streamed operands (f32 accumulation happens inside the kernel).
    lap_block = lap_block.astype(compute_dtype)
    wt_pack = wt_pack.astype(compute_dtype)
    x_flat = x_flat.astype(compute_dtype)

    out_flat = pl.pallas_call(
        agcn_kernel,
        out_shape=jax.ShapeDtypeStruct((G * J_pad, L), jnp.float32),
        grid_spec=pltpu.PrefetchScalarGridSpec(
            num_scalar_prefetch=0,
            grid=(n_steps,),
            in_specs=[
                pl.BlockSpec((R, R), lambda i: (0, 0)),   # block-diag L (shared)
                pl.BlockSpec((R, L), lambda i: (i, 0)),   # x slab for this chunk
                pl.BlockSpec((L, L), lambda i: (0, 0)),   # kron(I_P, W^T) (shared)
                pl.BlockSpec((1, L), lambda i: (0, 0)),   # bias (shared)
            ],
            out_specs=pl.BlockSpec((R, L), lambda i: (i, 0)),
        ),
        compiler_params=pltpu.CompilerParams(
            dimension_semantics=("parallel",),   # batch chunks shard across TCs on v7x
        ),
    )(lap_block, x_flat, wt_pack, b_pack)

    # Unpack: (G*J_pad, L) -> (G, J_pad, P, F) -> drop row padding -> (B, J, F)
    out = out_flat.reshape(G, J_pad, P, F)[:, :J]
    out = out.transpose(0, 2, 1, 3).reshape(B, J, F)
    return out.astype(out_dtype)


def agcn_reference(x, adj, w, b):
    # Mirrors the PyTorch forward exactly: out = (L @ x) @ W.T + b
    d_hat = jnp.sum(adj, axis=1, keepdims=True) + 1e-5
    lap = adj / d_hat
    h = jnp.einsum("jk,bkf->bjf", lap, x)
    return jnp.einsum("bjf,gf->bjg", h, w) + b


if __name__ == "__main__":
    # Small, module-consistent shapes: batch=8, num_joint=16, features=32.
    # (B=8 exercises the full 4-way lane packing and a 2-step parallel grid.)
    B, J, F = 8, 16, 32

    key = jax.random.PRNGKey(0)
    kx, kw, kb, ka = jax.random.split(key, 4)

    x = jax.random.normal(kx, (B, J, F), dtype=jnp.float32)

    # adj parameter initialized to eye (as in the module), perturbed slightly so the
    # row-normalization path is exercised non-trivially.
    adj = jnp.eye(J, dtype=jnp.float32) + 0.1 * jax.random.uniform(ka, (J, J), dtype=jnp.float32)

    # fc: Linear(features, features) init shapes
    bound = 1.0 / jnp.sqrt(jnp.float32(F))
    w = jax.random.uniform(kw, (F, F), minval=-bound, maxval=bound, dtype=jnp.float32)
    b = jax.random.uniform(kb, (F,), minval=-bound, maxval=bound, dtype=jnp.float32)

    ref = agcn_reference(x, adj, w, b)

    # bf16-operand path (default): f32 accumulation, bf16 input rounding -> loose tol.
    out = agcn_forward(x, adj, w, b)
    out = jax.block_until_ready(out)
    assert out.shape == (B, J, F)
    assert jnp.allclose(out, ref, atol=2e-2, rtol=2e-2), (
        f"bf16 path mismatch vs reference, max abs err {jnp.max(jnp.abs(out - ref))}")

    # Pure-f32 path: exact (up to f32 rounding) match against the reference.
    out_f32 = jax.block_until_ready(agcn_forward(x, adj, w, b, compute_dtype=jnp.float32))
    assert jnp.allclose(out_f32, ref, atol=1e-4, rtol=1e-4), "f32 path mismatch vs reference"

    print("KERNEL_OK")
</pallas_src>

<mosaic_0001>
module attributes {stable_mosaic.version = 11 : i64} {
  func.func @agcn_kernel(%arg0: i32, %arg1: memref<16x16xbf16, #tpu.memory_space<vmem>>, %arg2: memref<16x128xbf16, #tpu.memory_space<vmem>>, %arg3: memref<128x128xbf16, #tpu.memory_space<vmem>>, %arg4: memref<1x128xf32, #tpu.memory_space<vmem>>, %arg5: memref<16x128xf32, #tpu.memory_space<vmem>>) attributes {dimension_semantics = [#tpu.dimension_semantics<parallel>], iteration_bounds = array<i64: 2>, scalar_prefetch = 0 : i64, scratch_operands = 0 : i64, tpu.core_type = #tpu.core_type<tc>, window_params = [{pipeline_mode = #tpu.pipeline_mode<synchronous>, transform_indices = @transform_0, window_bounds = array<i64: 16, 16>}, {transform_indices = @transform_1, window_bounds = array<i64: 16, 128>}, {pipeline_mode = #tpu.pipeline_mode<synchronous>, transform_indices = @transform_2, window_bounds = array<i64: 128, 128>}, {pipeline_mode = #tpu.pipeline_mode<synchronous>, transform_indices = @transform_3, window_bounds = array<i64: 1, 128>}, {transform_indices = @transform_4, window_bounds = array<i64: 16, 128>}]} {
    %c0 = arith.constant 0 : index
    %c0_0 = arith.constant 0 : index
    %0 = vector.load %arg2[%c0, %c0_0] : memref<16x128xbf16, #tpu.memory_space<vmem>>, vector<16x128xbf16>
    %c0_1 = arith.constant 0 : index
    %c0_2 = arith.constant 0 : index
    %1 = vector.load %arg3[%c0_1, %c0_2] : memref<128x128xbf16, #tpu.memory_space<vmem>>, vector<128x128xbf16>
    %cst = arith.constant dense<0.000000e+00> : vector<16x128xf32>
    %2 = tpu.matmul %0, %1, %cst {dimension_numbers = #tpu.dot_dimension_numbers<[1], [0], [0], [1], [0, 0, 1, 1], [], []>} : vector<16x128xbf16>, vector<128x128xbf16>, vector<16x128xf32> -> vector<16x128xf32>
    %3 = arith.truncf %2 : vector<16x128xf32> to vector<16x128xbf16>
    %c0_3 = arith.constant 0 : index
    %c0_4 = arith.constant 0 : index
    %4 = vector.load %arg1[%c0_3, %c0_4] : memref<16x16xbf16, #tpu.memory_space<vmem>>, vector<16x16xbf16>
    %cst_5 = arith.constant dense<0.000000e+00> : vector<16x128xf32>
    %5 = tpu.matmul %4, %3, %cst_5 {dimension_numbers = #tpu.dot_dimension_numbers<[1], [0], [0], [1], [0, 0, 1, 1], [], []>} : vector<16x16xbf16>, vector<16x128xbf16>, vector<16x128xf32> -> vector<16x128xf32>
    %c0_6 = arith.constant 0 : index
    %c0_7 = arith.constant 0 : index
    %6 = vector.load %arg4[%c0_6, %c0_7] : memref<1x128xf32, #tpu.memory_space<vmem>>, vector<1x128xf32>
    %7 = vector.broadcast %6 : vector<1x128xf32> to vector<16x128xf32>
    %8 = arith.addf %5, %7 : vector<16x128xf32>
    %c0_8 = arith.constant 0 : index
    %c0_9 = arith.constant 0 : index
    %9 = vector.load %arg5[%c0_8, %c0_9] : memref<16x128xf32, #tpu.memory_space<vmem>>, vector<16x128xf32>
    tpu.vector_store %arg5[%c0_8, %c0_9], %8 {strides = array<i32>} : memref<16x128xf32, #tpu.memory_space<vmem>>, vector<16x128xf32>,
    return
  }
  func.func @transform_0(%arg0: i32) -> (i32, i32) {
    %c0_i32 = arith.constant 0 : i32
    %c0_i32_0 = arith.constant 0 : i32
    %c0_i32_1 = arith.constant 0 : i32
    return %c0_i32, %c0_i32_0 : i32, i32
  }
  func.func @transform_1(%arg0: i32) -> (i32, i32) {
    %c0_i32 = arith.constant 0 : i32
    %c0_i32_0 = arith.constant 0 : i32
    return %arg0, %c0_i32 : i32, i32
  }
  func.func @transform_2(%arg0: i32) -> (i32, i32) {
    %c0_i32 = arith.constant 0 : i32
    %c0_i32_0 = arith.constant 0 : i32
    %c0_i32_1 = arith.constant 0 : i32
    return %c0_i32, %c0_i32_0 : i32, i32
  }
  func.func @transform_3(%arg0: i32) -> (i32, i32) {
    %c0_i32 = arith.constant 0 : i32
    %c0_i32_0 = arith.constant 0 : i32
    %c0_i32_1 = arith.constant 0 : i32
    return %c0_i32, %c0_i32_0 : i32, i32
  }
  func.func @transform_4(%arg0: i32) -> (i32, i32) {
    %c0_i32 = arith.constant 0 : i32
    %c0_i32_0 = arith.constant 0 : i32
    return %arg0, %c0_i32 : i32, i32
  }
}

</mosaic_0001>

<bundles_post_ra>
// kernel: tpu_custom_call.1
= control target key start
LH: loop header
LB: loop body
LE: loop exit
PB: predicated region body
PF: predicated region fallthrough
CT: control target
= control target key end

     0   :  { %9 = vsyncpa [#allocation3], 0  ;;  %s1127_s0 = inlined_call_operand.hbm [shape: bf16[16,16], index: 0, kind: input, shape index: {}]   ;;  %s1128_s1 = inlined_call_operand.hbm [shape: bf16[32,128], index: 1, kind: input, shape index: {}]   ;;  %s1129_s2 = inlined_call_operand.hbm [shape: bf16[128,128], index: 2, kind: input, shape index: {}]   ;;  %s1130_s3 = inlined_call_operand.vmem [shape: f32[1,128], index: 3, kind: input, shape index: {}]   ;;  %s1131_s4 = inlined_call_operand.hbm [shape: f32[32,128], index: 4, kind: output, shape index: {}]  }
   0x1   :  { %10 = vsyncpa [#allocation6], 0 }
   0x2   :  { %12 = vsyncpa [#allocation6 + $0x1], 0 }
   0x3   :  { %13 = vsyncpa [#allocation4], 0 }
   0x4   :  { %15 = vsyncpa [#allocation4 + $0x1], 0  ;;  %s880_s15 = smov 0   ;;  %s882_s16 = smov 0  }
   0x5   :  { %s884_s17 = smov 0   ;;  %s886_s18 = smov 0  }
   0x6 LB: > { %s901_s19 = sadd.s32 4294967295, %s843_s18   ;;  %s531_s20 = sadd.s32 4294967294, %s843_s18   ;;  %s843_s18 = sphi %s886_s18, %s1159_s18   ;;  %s839_s17 = sphi %s884_s17, %s1158_s17   ;;  %s835_s16 = sphi %s882_s16, %s1157_s16   ;;  %s831_s15 = sphi %s880_s15, %s1156_s15  }
   0x7   : > { %s905_s21 = sadd.s32 1, %s843_s18   ;;  %s49_s22 = sadd.s32 1, %s839_s17 }
   0x8   : > { %s46_s23 = ssub.s32 %s843_s18, %s905_s21  ;;  %p56_p0 = scmp.ne.s32.totalorder %s839_s17, %s835_s16 }
   0x9   : > { %p47_p1 = scmp.eq.s32.totalorder %s46_s23, 0  ;;  %p57_p2 = scmp.eq.s32.totalorder %s843_s18, 0 }
   0xa   : > { %p62_p3 = scmp.ne.s32.totalorder %s835_s16, %s831_s15  ;;  %p1133_p4 = scmp.eq.s32.totalorder %s901_s19, 0 }
   0xb   : > { %s917_s24 = scalar_select %p47_p1, %s839_s17, %s49_s22  }
   0xc   : > { %p919_p5 = por %p57_p2, %p56_p0  ;;  %p925_p6 = por %p1133_p4, %p62_p3 }
   0xd   : > { %p128_p7 = scmp.eq.s32.totalorder %s901_s19, 1  ;;  %p134_p8 = scmp.eq.s32.totalorder %s531_s20, 1 }
   0xe   : > { %s1137_s25 = scalar_select %p919_p5, 1, 0 }
   0xf   : > { %s1138_s26 = scalar_select %p925_p6, 1, 0 }
  0x10   : > { %p532_p9 = scmp.ge.s32.totalorder %s843_s18, 1  ;;  %p141_p10 = scmp.lt.s32.totalorder %s843_s18, 3 }
  0x11   : > { %p932_p11 = por %p128_p7, %p56_p0  ;;  %p936_p12 = por %p134_p8, %p62_p3 }
  0x12   : > { %p940_p13 = pnand %p532_p9, %p141_p10  ;;  %s845_s30 = smov [#allocation7]  }
  0x13   : > { %s1139_s27 = scalar_select %p932_p11, 1, 0 }
  0x14   : > { %s1140_s28 = scalar_select %p936_p12, 1, 0 }
  0x15   : > { %s1141_s29 = scalar_select %p940_p13, 1, 0 }
  0x16   : > { %p612_p1 = pneg %p940_p13  ;;  %s166_s5 = sshll.u32 %s845_s30, 4  ;;  %s167_s5 = int_to_ptr.vmem [resolvable:$true] %s166_s5 }
  0x17   : > { %s846_s7 = smov [#allocation2]   ;;  %s683_s11 = scalar_lea.hbm %s1129_s2, 1024 }
  0x18   : > { %p949_p6 = pnand %p612_p1, %p1133_p4  ;;  %s153_s8 = sshll.u32 %s846_s7, 4  ;;  %s154_s8 = int_to_ptr.vmem [resolvable:$true] %s153_s8 }
  0x19   : > { %p684_p3 = scmp.ne.s32.totalorder %s1129_s2, %s683_s11  ;;  %p690_p10 = scmp.lt.u32.totalorder %s683_s11, %s1129_s2 }
  0x1a   : > { %p685_p7 = pneg %p949_p6 }
  0x1c   : > { %p686_p8 = pnand %p685_p7, %p684_p3 }
  0x1e   : > { %p687_p9 = pneg %p686_p8 }
  0x20   : > { %p692_p1 = pnand %p690_p10, %p687_p9 }
  0x22   : > { %695 = shalt.err (!%p692_p1)
}
  0x23   : > { %s696_s22 = scalar_lea.vmem %s167_s5, 1024  ;;  %p704_p12 = scmp.lt.s32.totalorder %s167_s5, %s167_s5 }
  0x24   : > { %p697_p2 = scmp.ne.s32.totalorder %s167_s5, %s696_s22  ;;  %p705_p11 = scmp.lt.s32.totalorder %s696_s22, %s696_s22 }
  0x26   : > { %p699_p4 = pnand %p697_p2, %p685_p7  ;;  %p706_p13 = por %p705_p11, %p704_p12 }
  0x28   : > { %p700_p0 = pneg %p699_p4 }
  0x2a   : > { %p707_p5 = pnand %p706_p13, %p700_p0 }
  0x2c   : > { %710 = shalt.err (!%p707_p5)
}
  0x2d   : > { %s847_s23 = smov 64   ;;  %s848_s30 = smov 4  }
  0x2e   : > { %618 = dma.hbm_to_vmem [thread:$0]  (!%p949_p6), %s1129_s2, 1024, %s167_s5, [#allocation6], %s847_s23, %s847_s23, %s848_s30  }
  0x2f   : > { %p1143_p4 = scmp.ne.s32.totalorder %s1137_s25, 0  ;;  %p1144_p2 = scmp.lt.s32.totalorder %s843_s18, 2 }
  0x30   : > { %s711_s13 = scalar_lea.hbm %s1127_s0, 128 }
  0x31   : > { %p983_p3 = pnand %p1144_p2, %p1143_p4  ;;  %p712_p5 = scmp.ne.s32.totalorder %s1127_s0, %s711_s13 }
  0x32   : > { %p718_p13 = scmp.lt.u32.totalorder %s711_s13, %s1127_s0 }
  0x33   : > { %s1145_s10 = scalar_select %p983_p3, 1, 0 }
  0x34   : > { %p714_p11 = pnand %p712_p5, %p685_p7 }
  0x36   : > { %p715_p12 = pneg %p714_p11 }
  0x38   : > { %p720_p0 = pnand %p718_p13, %p715_p12 }
  0x3a   : > { %723 = shalt.err (!%p720_p0)
}
  0x3b   : > { %s724_s22 = scalar_lea.vmem %s154_s8, 128  ;;  %p732_p1 = scmp.lt.s32.totalorder %s154_s8, %s154_s8 }
  0x3c   : > { %p725_p8 = scmp.ne.s32.totalorder %s154_s8, %s724_s22  ;;  %p733_p4 = scmp.lt.s32.totalorder %s724_s22, %s724_s22 }
  0x3e   : > { %p727_p9 = pnand %p725_p8, %p685_p7  ;;  %p734_p2 = por %p733_p4, %p732_p1 }
  0x40   : > { %p728_p10 = pneg %p727_p9 }
  0x42   : > { %p735_p3 = pnand %p734_p2, %p728_p10 }
  0x44   : > { %738 = shalt.err (!%p735_p3)
}
  0x45   : > { %615 = dma.hbm_to_vmem [thread:$0]  (!%p949_p6), %s1127_s0, 128, %s154_s8, [#allocation3], %s847_s23, %s847_s23, %s848_s30  }
  0x46   : > { %s183_s11 = sand.u32 1, %s843_s18   ;;  %s185_s12 = sand.u32 1, %s839_s17  }
  0x47   : > { %s536_s13 = sshll.u32 %s185_s12, 3  ;;  %s561_s14 = sshll.u32 %s843_s18, 7 }
  0x48   : > { %s1016_s6 = scalar_lea.hbm %s1128_s1, %s561_s14  ;;  %s187_s25 = scalar_lea.vmem [#allocation5], %s536_s13 }
  0x49   : > { %s194_s22 = sshll.u32 %s187_s25, 4  ;;  %s1020_s7 = scalar_lea.sflag [#allocation6], %s183_s11  ;;  %s1018_s22 = int_to_ptr.vmem [resolvable:$true] %s194_s22 }
  0x4a   : > { %s739_s8 = scalar_lea.hbm %s1016_s6, 128  ;;  %p1146_p7 = scmp.ne.s32.totalorder %s1145_s10, 0 }
  0x4b   : > { %p740_p6 = scmp.ne.s32.totalorder %s1016_s6, %s739_s8  ;;  %s744_s14 = scalar_lea.hbm %s1128_s1, 256 }
  0x4c   : > { %p741_p3 = pneg %p1146_p7  ;;  %p745_p12 = scmp.lt.u32.totalorder %s1016_s6, %s1128_s1 }
  0x4d   : > { %p746_p13 = scmp.lt.u32.totalorder %s744_s14, %s739_s8  ;;  %p748_p8 = scmp.lt.u32.totalorder %s739_s8, %s1016_s6 }
  0x4e   : > { %p742_p5 = pnand %p741_p3, %p740_p6 }
  0x4f   : > { %p747_p0 = por %p746_p13, %p745_p12 }
  0x50   : > { %p743_p11 = pneg %p742_p5 }
  0x51   : > { %p749_p9 = por %p748_p8, %p747_p0 }
  0x53   : > { %p750_p10 = pnand %p749_p9, %p743_p11 }
  0x55   : > { %753 = shalt.err (!%p750_p10)
}
  0x56   : > { %s754_s11 = scalar_lea.vmem %s1018_s22, 128  ;;  %s849_s13 = smov [#allocation5]  }
  0x57   : > { %p755_p1 = scmp.ne.s32.totalorder %s1018_s22, %s754_s11  ;;  %s759_s25 = sshll.u32 %s849_s13, 4  ;;  %s760_s25 = int_to_ptr.vmem [resolvable:$false] %s759_s25 }
  0x58   : > { %s761_s9 = scalar_lea.vmem %s760_s25, 256  ;;  %p762_p6 = scmp.lt.s32.totalorder %s1018_s22, %s760_s25 }
  0x59   : > { %p757_p4 = pnand %p755_p1, %p741_p3  ;;  %p763_p5 = scmp.lt.s32.totalorder %s761_s9, %s754_s11 }
  0x5b   : > { %p758_p2 = pneg %p757_p4  ;;  %p764_p12 = por %p763_p5, %p762_p6 }
  0x5d   : > { %p765_p13 = pnand %p764_p12, %p758_p2 }
  0x5f   : > { %768 = shalt.err (!%p765_p13)
}
  0x60   : > { %622 = dma.hbm_to_vmem [thread:$0]  (!%p1146_p7), %s1016_s6, 128, %s1018_s22, %s1020_s7, %s847_s23, %s847_s23, %s848_s30  }
  0x61   : > { %p1147_p3 = scmp.ne.s32.totalorder %s1141_s29, 0 }
  0x62   : > { %p1148_p11 = scmp.eq.s32.totalorder (!%p1147_p3), %s901_s19, 0 }
  0x63   : > { %206 = sbr.rel (%p1147_p3) target bundleno = 599 (0x257), region = 36 }
  0x6a   : > { %814 = dma.done.wait (%p1148_p11), [#allocation3], 128   ;;  %p1149_p0 = pmov %p1148_p11 }
  0x6b   : > { %s212_s10 = sand.u32 1, %s901_s19   ;;  %s1059_s8 = sand.u32 1, %s835_s16  }
  0x6c   : > { %816 = vsyncadd (%p1149_p0), [#allocation3], 4294967168  ;;  %s541_s12 = sshll.u32 %s1059_s8, 3  ;;  %s213_s14 = scalar_lea.sflag [#allocation6], %s212_s10 }
  0x6d   : > { %s1062_s20 = scalar_lea.vmem [#allocation5], %s541_s12  ;;  %p1150_p7 = scmp.ne.s32.totalorder %s1138_s26, 0 }
  0x6f   : > { %818 = dma.done.wait (%p1150_p7), %s213_s14, 128  }
  0x70   : > { %820 = vsyncadd (%p1150_p7), %s213_s14, 4294967168  ;;  %p1151_p8 = pmov %p1149_p0 }
  0x71   : > { %p1152_p9 = pmov %p1149_p0 }
  0x72   : > { %822 = dma.done.wait (%p1151_p8), [#allocation6], 1024  }
  0x73   : > { %824 = vsyncadd (%p1152_p9), [#allocation6], 4294966272  ;;  %v850_v0 = vmov 0.0   ;;  %vm851_vm0 = vmmov 0   ;;  %v673_v1 = vld [vmem:[#allocation7] sm:$0xff]   ;;  %v674_v2 = vld [vmem:[#allocation7 + $0x8] sm:$0xff]  }
  0x74   : > { %574 = vmatprep.subr.bf16.mxu0 %v850_v0  ;;  %590 = vmatprep.mubr.msk.bf16.mxu0 %vm851_vm0, %v850_v0  ;;  %v675_v3 = vld [vmem:[#allocation7 + $0x10] sm:$0xff]   ;;  %v676_v4 = vld [vmem:[#allocation7 + $0x18] sm:$0xff]   ;;  %v677_v5 = vld [vmem:[#allocation7 + $0x20] sm:$0xff]   ;;  %vm376_vm1 = vcmask 130048   ;;  %s543_s26 = sshll.u32 %s1059_s8, 4  ;;  %s562_s22 = sshll.u32 %s901_s19, 8 }
  0x75   : > { %594 = vmatprep.subr.bf16.mxu1 %v850_v0  ;;  %596 = vmatprep.mubr.msk.bf16.mxu1 %vm851_vm0, %v850_v0  ;;  %v678_v6 = vld [vmem:[#allocation7 + $0x28] sm:$0xff]   ;;  %v679_v7 = vld [vmem:[#allocation7 + $0x30] sm:$0xff]   ;;  %v680_v8 = vld [vmem:[#allocation7 + $0x38] sm:$0xff]   ;;  %s244_s30 = scalar_lea.vmem [#allocation8], %s543_s26  ;;  %s1083_s11 = scalar_lea.hbm %s1131_s4, %s562_s22 }
  0x76   : > { %575 = vmatpush3.bf16.msra.mxu0 %v673_v1  ;;  %v681_v9 = vld [vmem:[%s1062_s20] sm:$0xff]   ;;  %v682_v15 = vld [vmem:[#allocation2] sm:$0xff]   ;;  %s437_s6 = sshll.u32 %s244_s30, 4  ;;  %s424_s13 = scalar_lea.sflag [#allocation4], %s1059_s8  ;;  %s1078_s6 = int_to_ptr.vmem [resolvable:$true] %s437_s6 }
  0x77   : > { %576 = vmatprep.subr.bf16.mxu0 %v850_v0  ;;  %v553_v16 = vld [vmem:[%s1130_s3] ss:$0 sm:$0xff]  ;;  %s769_s19 = scalar_lea.vmem %s1078_s6, 256  ;;  %p1153_p1 = scmp.ne.s32.totalorder %s1139_s27, 0 }
  0x78   : > { %p770_p10 = scmp.ne.s32.totalorder %s1078_s6, %s769_s19  ;;  %s852_s25 = smov [#allocation8]  }
  0x79   : > { %s773_s9 = sshll.u32 %s852_s25, 4  ;;  %s774_s9 = int_to_ptr.vmem [resolvable:$false] %s773_s9 }
  0x7a   : > { %577 = vmatpush3.bf16.msra.mxu0 %v674_v2  ;;  %p771_p4 = pnand %p770_p10, %p1153_p1  ;;  %s775_s10 = scalar_lea.vmem %s774_s9, 512 }
  0x7b   : > { %578 = vmatprep.subr.bf16.mxu0 %v850_v0  ;;  %p776_p6 = scmp.lt.s32.totalorder %s1078_s6, %s774_s9  ;;  %p777_p5 = scmp.lt.s32.totalorder %s775_s10, %s769_s19 }
  0x7c   : > { %p772_p2 = pneg %p771_p4 }
  0x7d   : > { %p778_p12 = por %p777_p5, %p776_p6 }
  0x7e   : > { %579 = vmatpush3.bf16.msra.mxu0 %v675_v3 }
  0x7f   : > { %580 = vmatprep.subr.bf16.mxu0 %v850_v0  ;;  %p779_p13 = pnand %p778_p12, %p772_p2 }
  0x82   : > { %581 = vmatpush3.bf16.msra.mxu0 %v676_v4 }
  0x83   : > { %582 = vmatprep.subr.bf16.mxu0 %v850_v0 }
  0x86   : > { %583 = vmatpush3.bf16.msra.mxu0 %v677_v5 }
  0x87   : > { %584 = vmatprep.subr.bf16.mxu0 %v850_v0 }
  0x8a   : > { %585 = vmatpush3.bf16.msra.mxu0 %v678_v6 }
  0x8b   : > { %586 = vmatprep.subr.bf16.mxu0 %v850_v0 }
  0x8e   : > { %587 = vmatpush3.bf16.msra.mxu0 %v679_v7 }
  0x8f   : > { %588 = vmatprep.subr.bf16.mxu0 %v850_v0 }
  0x92   : > { %589 = vmatpush3.bf16.msra.mxu0 %v680_v8 }
  0x95   : > { %591 = vmatmul.mubr.bf16.vlgmr.msra.gmra.mrb[0].mxu0 %v681_v9 }
 0x168   : > { %v354_v10 = vpop.f32.mrb[0].mxu0 }
 0x169   : > { %v592_v11 = vpop.f32.mrb[1].mxu0 }
 0x16a   : > { %v357_v12 = vpop.f32.mrb[2].mxu0 }
 0x16b   : > { %v361_v13 = vpack.c.bf16 %v357_v12, %v354_v10  ;;  %v593_v14 = vpop.f32.mrb[3].mxu0 }
 0x16d   : > { %595 = vmatpush3.bf16.msra.mxu1 %v361_v13 }
 0x170   : > { %597 = vmatmul.mubr.msk.bf16.vlgmr.msra.gmra.mrb[0].mxu1 %vm376_vm1, %v682_v15 }
 0x243   : > { %v414_v17 = vpop.f32.mrb[0].mxu1 }
 0x244   : > { %v415_v18 = vadd.f32 %v553_v16, %v414_v17  ;;  %v598_v19 = vpop.f32.mrb[1].mxu1 }
 0x245   : > { %v417_v20 = vpop.f32.mrb[2].mxu1 }
 0x246   : > { %421 = vst [vmem:[%s244_s30] sm:$0xff] %v415_v18  ;;  %v418_v21 = vadd.f32 %v553_v16, %v417_v20  ;;  %v599_v22 = vpop.f32.mrb[3].mxu1 }
 0x248   : > { %422 = vst [vmem:[%s244_s30 + $0x8] sm:$0xff] %v418_v21 }
 0x249   : > { %782 = shalt.err (!%p779_p13)
}
 0x24a   : > { %s783_s12 = scalar_lea.hbm %s1083_s11, 256  ;;  %s787_s26 = scalar_lea.hbm %s1131_s4, 512 }
 0x24b   : > { %p784_p3 = scmp.ne.s32.totalorder %s1083_s11, %s783_s12  ;;  %p788_p7 = scmp.lt.u32.totalorder %s1083_s11, %s1131_s4 }
 0x24c   : > { %p789_p8 = scmp.lt.u32.totalorder %s787_s26, %s783_s12  ;;  %p791_p10 = scmp.lt.u32.totalorder %s783_s12, %s1083_s11 }
 0x24d   : > { %p785_p11 = pnand %p784_p3, %p1153_p1 }
 0x24e   : > { %p790_p9 = por %p789_p8, %p788_p7 }
 0x24f   : > { %p786_p0 = pneg %p785_p11 }
 0x250   : > { %p792_p4 = por %p791_p10, %p790_p9 }
 0x252   : > { %p793_p2 = pnand %p792_p4, %p786_p0 }
 0x254   : > { %796 = shalt.err (!%p793_p2)
}
 0x255   : > { %s853_s30 = smov 128   ;;  %s854_s22 = smov 8  }
 0x256   : > { %610 = dma.vmem_to_hbm [thread:$0]  (%p1153_p1), %s1078_s6, 256, %s1083_s11, %s424_s13, %s853_s30, %s853_s30, %s854_s22  }
 0x257 PF: > { %s452_s7 = sand.u32 1, %s831_s15   ;;  %p1154_p6 = scmp.ne.s32.totalorder %s1140_s28, 0 }
 0x258   : > { %p1155_p5 = scmp.ge.s32.totalorder %s843_s18, 2  ;;  %s453_s5 = scalar_lea.sflag [#allocation4], %s452_s7 }
 0x25a   : > { %p624_p12 = pnand %p1155_p5, %p1154_p6 }
 0x25c   : > { %826 = dma.done.wait (!%p624_p12), %s453_s5, 256  }
 0x25d   : > { %828 = vsyncadd (!%p624_p12), %s453_s5, 4294967040  ;;  %p18_p13 = scmp.ge.s32.totalorder %s905_s21, 4   ;;  %s1156_s15 = smov %s835_s16 }
 0x25e   : > { %s1157_s16 = smov %s839_s17  ;;  %s1158_s17 = smov %s917_s24 }
 0x25f   : > { %s1159_s18 = smov %s905_s21  ;;  %20 = sbr.rel (!%p18_p13) target bundleno = 6 (0x6), region = 90 }
 0x266   :  { %458 = vsyncpa [#allocation3], 1 }
 0x267   :  { %460 = vsyncpa [#allocation3 + $0x1], 1 }
 0x268   :  { %461 = vsyncpa [#allocation6], 1 }
 0x269   :  { %463 = vsyncpa [#allocation6 + $0x1], 1 }
 0x26a   :  { %464 = vsyncpa [#allocation4], 1 }
 0x26b   :  { %466 = vsyncpa [#allocation4 + $0x1], 1 }

</bundles_post_ra>
